<compile_context>
chip_gen: v7x
topology: tpu7x:2x2x1
jax: 0.10.0
libtpu: 0.0.40
codegen_flags: <defaults>
</compile_context>

<pallas_src>
import jax
import jax.numpy as jnp
from jax.experimental import pallas as pl
from jax.experimental.pallas import tpu as pltpu


def _round_up(n, m):
    return ((n + m - 1) // m) * m


def _mlp_kernel(x_ref, w1_ref, b1_ref, w2_ref, b2_ref, o_ref):
    # fc1: (TM, in) @ (in, hidden_pad) on the MXU, f32 accumulation, +bias, ReLU.
    h = jnp.dot(x_ref[...], w1_ref[...], preferred_element_type=jnp.float32)
    h = jnp.maximum(h + b1_ref[...], 0.0)
    # fc2: feed the ReLU output back to the MXU in the compute dtype (bf16).
    y = jnp.dot(h.astype(w2_ref.dtype), w2_ref[...],
                preferred_element_type=jnp.float32)
    o_ref[...] = (y + b2_ref[...]).astype(o_ref.dtype)


def feature_extractor_forward(x, w1, b1, w2, b2, *,
                              tile_m=1024,
                              compute_dtype=jnp.bfloat16,
                              out_dtype=jnp.float32):
    """relu(x @ w1 + b1) @ w2 + b2.

    x : (N, input_dim)     w1: (input_dim, hidden)  b1: (1, hidden)
    w2: (hidden, out_dim)  b2: (1, out_dim)         -> (N, out_dim) in out_dtype.
    """
    N, input_dim = x.shape
    hidden = w1.shape[1]
    out_dim = w2.shape[1]

    # Lane-dense intermediate: pad hidden up to a multiple of 128. Padded
    # columns of w1/b1 are zero -> ReLU output there is exactly 0, and the
    # matching padded rows of w2 are zero, so the result is unchanged.
    hid_pad = _round_up(hidden, 128)
    if hid_pad != hidden:
        w1 = jnp.pad(w1, ((0, 0), (0, hid_pad - hidden)))
        b1 = jnp.pad(b1, ((0, 0), (0, hid_pad - hidden)))
        w2 = jnp.pad(w2, ((0, hid_pad - hidden), (0, 0)))

    # Lane-dense output: pad output channels up to a multiple of 128 so the
    # final stores are unmasked full-width vst. Padded w2/b2 columns are zero.
    out_pad = _round_up(out_dim, 128)
    if out_pad != out_dim:
        w2 = jnp.pad(w2, ((0, 0), (0, out_pad - out_dim)))
        b2 = jnp.pad(b2, ((0, 0), (0, out_pad - out_dim)))

    # bf16 MXU operands; biases stay f32 (added after f32 accumulation).
    # TODO(synk): in=32 contractions under-fill the 128-wide MXU; if layout were
    # free, batch several extractors along the lane axis instead.
    x = x.astype(compute_dtype)
    w1 = w1.astype(compute_dtype)
    w2 = w2.astype(compute_dtype)
    b1 = b1.astype(jnp.float32)
    b2 = b2.astype(jnp.float32)

    # Batch tiling: TM rows per grid step (multiple of 8); zero-pad N so every
    # block is full, then slice the padding off after the call.
    tm = min(tile_m, _round_up(N, 8))
    n_pad = _round_up(N, tm)
    if n_pad != N:
        x = jnp.pad(x, ((0, n_pad - N), (0, 0)))
    grid = (n_pad // tm,)

    bytes_accessed = (x.size * x.dtype.itemsize
                      + w1.size * w1.dtype.itemsize
                      + w2.size * w2.dtype.itemsize
                      + b1.size * 4 + b2.size * 4
                      + n_pad * out_pad * jnp.dtype(out_dtype).itemsize)
    cost = pl.CostEstimate(
        flops=2 * n_pad * (input_dim * hid_pad + hid_pad * out_pad),
        transcendentals=0,
        bytes_accessed=bytes_accessed,
    )

    out = pl.pallas_call(
        _mlp_kernel,
        out_shape=jax.ShapeDtypeStruct((n_pad, out_pad), out_dtype),
        grid_spec=pltpu.PrefetchScalarGridSpec(
            num_scalar_prefetch=0,
            grid=grid,
            in_specs=[
                pl.BlockSpec((tm, input_dim), lambda i: (i, 0)),       # x tile (pipelined)
                pl.BlockSpec((input_dim, hid_pad), lambda i: (0, 0)),  # w1 (VMEM-resident)
                pl.BlockSpec((1, hid_pad), lambda i: (0, 0)),          # b1 (VMEM-resident)
                pl.BlockSpec((hid_pad, out_pad), lambda i: (0, 0)),    # w2 (VMEM-resident)
                pl.BlockSpec((1, out_pad), lambda i: (0, 0)),          # b2 (VMEM-resident)
            ],
            out_specs=pl.BlockSpec((tm, out_pad), lambda i: (i, 0)),
        ),
        compiler_params=pltpu.CompilerParams(
            dimension_semantics=("parallel",),      # v7x: shard row-tiles over 2 TCs
            vmem_limit_bytes=32 * 1024 * 1024,
        ),
        cost_estimate=cost,
    )(x, w1, b1, w2, b2)

    return out[:N, :out_dim]


def init_params(key, input_dim, hidden_dim=64, output_dim=32):
    """PyTorch-style nn.Linear init: U(-1/sqrt(fan_in), 1/sqrt(fan_in))."""
    k1, k2, k3, k4 = jax.random.split(key, 4)
    bound1 = 1.0 / jnp.sqrt(jnp.float32(input_dim))
    bound2 = 1.0 / jnp.sqrt(jnp.float32(hidden_dim))
    # Stored as (in, out) = transpose of PyTorch's (out, in).
    w1 = jax.random.uniform(k1, (input_dim, hidden_dim), jnp.float32, -bound1, bound1)
    b1 = jax.random.uniform(k2, (1, hidden_dim), jnp.float32, -bound1, bound1)
    w2 = jax.random.uniform(k3, (hidden_dim, output_dim), jnp.float32, -bound2, bound2)
    b2 = jax.random.uniform(k4, (1, output_dim), jnp.float32, -bound2, bound2)
    return w1, b1, w2, b2


def _reference(x, w1, b1, w2, b2, compute_dtype=jnp.bfloat16):
    """Pure-JAX reference emulating the kernel's bf16-operand / f32-accum math."""
    f32 = jnp.float32
    xb = x.astype(compute_dtype).astype(f32)
    w1b = w1.astype(compute_dtype).astype(f32)
    w2b = w2.astype(compute_dtype).astype(f32)
    h = jnp.maximum(xb @ w1b + b1.astype(f32), 0.0)
    hb = h.astype(compute_dtype).astype(f32)
    return hb @ w2b + b2.astype(f32)


if __name__ == "__main__":
    key = jax.random.PRNGKey(0)
    k_x, k_p, k_big = jax.random.split(key, 3)

    batch = 8
    input_dim = 32
    hidden_dim = 64
    output_dim = 32

    w1, b1, w2, b2 = init_params(k_p, input_dim, hidden_dim, output_dim)

    fwd = jax.jit(feature_extractor_forward)

    # Small case (single tile, grid=(1,)).
    x = jax.random.normal(k_x, (batch, input_dim), jnp.float32)
    out = jax.block_until_ready(fwd(x, w1, b1, w2, b2))
    ref = _reference(x, w1, b1, w2, b2)
    assert out.shape == (batch, output_dim)
    assert jnp.allclose(out, ref, atol=1e-2, rtol=1e-2)

    # Larger, non-multiple batch: exercises row tiling + zero-padding path.
    big_n = 2070
    x_big = jax.random.normal(k_big, (big_n, input_dim), jnp.float32)
    out_big = jax.block_until_ready(fwd(x_big, w1, b1, w2, b2))
    ref_big = _reference(x_big, w1, b1, w2, b2)
    assert out_big.shape == (big_n, output_dim)
    assert jnp.allclose(out_big, ref_big, atol=1e-2, rtol=1e-2)

    print("KERNEL_OK")
</pallas_src>

<mosaic_0001>
module attributes {stable_mosaic.version = 11 : i64} {
  func.func @_mlp_kernel(%arg0: i32, %arg1: memref<8x32xbf16, #tpu.memory_space<vmem>>, %arg2: memref<32x128xbf16, #tpu.memory_space<vmem>>, %arg3: memref<1x128xf32, #tpu.memory_space<vmem>>, %arg4: memref<128x128xbf16, #tpu.memory_space<vmem>>, %arg5: memref<1x128xf32, #tpu.memory_space<vmem>>, %arg6: memref<8x128xf32, #tpu.memory_space<vmem>>) attributes {dimension_semantics = [#tpu.dimension_semantics<parallel>], iteration_bounds = array<i64: 1>, scalar_prefetch = 0 : i64, scratch_operands = 0 : i64, tpu.core_type = #tpu.core_type<tc>, window_params = [{transform_indices = @transform_0, window_bounds = array<i64: 8, 32>}, {pipeline_mode = #tpu.pipeline_mode<synchronous>, transform_indices = @transform_1, window_bounds = array<i64: 32, 128>}, {pipeline_mode = #tpu.pipeline_mode<synchronous>, transform_indices = @transform_2, window_bounds = array<i64: 1, 128>}, {pipeline_mode = #tpu.pipeline_mode<synchronous>, transform_indices = @transform_3, window_bounds = array<i64: 128, 128>}, {pipeline_mode = #tpu.pipeline_mode<synchronous>, transform_indices = @transform_4, window_bounds = array<i64: 1, 128>}, {transform_indices = @transform_5, window_bounds = array<i64: 8, 128>}]} {
    %c0 = arith.constant 0 : index
    %c0_0 = arith.constant 0 : index
    %0 = vector.load %arg1[%c0, %c0_0] : memref<8x32xbf16, #tpu.memory_space<vmem>>, vector<8x32xbf16>
    %c0_1 = arith.constant 0 : index
    %c0_2 = arith.constant 0 : index
    %1 = vector.load %arg2[%c0_1, %c0_2] : memref<32x128xbf16, #tpu.memory_space<vmem>>, vector<32x128xbf16>
    %cst = arith.constant dense<0.000000e+00> : vector<8x128xf32>
    %2 = tpu.matmul %0, %1, %cst {dimension_numbers = #tpu.dot_dimension_numbers<[1], [0], [0], [1], [0, 0, 1, 1], [], []>} : vector<8x32xbf16>, vector<32x128xbf16>, vector<8x128xf32> -> vector<8x128xf32>
    %c0_3 = arith.constant 0 : index
    %c0_4 = arith.constant 0 : index
    %3 = vector.load %arg3[%c0_3, %c0_4] : memref<1x128xf32, #tpu.memory_space<vmem>>, vector<1x128xf32>
    %4 = vector.broadcast %3 : vector<1x128xf32> to vector<8x128xf32>
    %5 = arith.addf %2, %4 : vector<8x128xf32>
    %cst_5 = arith.constant 0.000000e+00 : f32
    %6 = vector.broadcast %cst_5 : f32 to vector<8x128xf32>
    %7 = arith.maximumf %5, %6 : vector<8x128xf32>
    %8 = arith.truncf %7 : vector<8x128xf32> to vector<8x128xbf16>
    %c0_6 = arith.constant 0 : index
    %c0_7 = arith.constant 0 : index
    %9 = vector.load %arg4[%c0_6, %c0_7] : memref<128x128xbf16, #tpu.memory_space<vmem>>, vector<128x128xbf16>
    %cst_8 = arith.constant dense<0.000000e+00> : vector<8x128xf32>
    %10 = tpu.matmul %8, %9, %cst_8 {dimension_numbers = #tpu.dot_dimension_numbers<[1], [0], [0], [1], [0, 0, 1, 1], [], []>} : vector<8x128xbf16>, vector<128x128xbf16>, vector<8x128xf32> -> vector<8x128xf32>
    %c0_9 = arith.constant 0 : index
    %c0_10 = arith.constant 0 : index
    %11 = vector.load %arg5[%c0_9, %c0_10] : memref<1x128xf32, #tpu.memory_space<vmem>>, vector<1x128xf32>
    %12 = vector.broadcast %11 : vector<1x128xf32> to vector<8x128xf32>
    %13 = arith.addf %10, %12 : vector<8x128xf32>
    %c0_11 = arith.constant 0 : index
    %c0_12 = arith.constant 0 : index
    %14 = vector.load %arg6[%c0_11, %c0_12] : memref<8x128xf32, #tpu.memory_space<vmem>>, vector<8x128xf32>
    tpu.vector_store %arg6[%c0_11, %c0_12], %13 {strides = array<i32>} : memref<8x128xf32, #tpu.memory_space<vmem>>, vector<8x128xf32>,
    return
  }
  func.func @transform_0(%arg0: i32) -> (i32, i32) {
    %c0_i32 = arith.constant 0 : i32
    %c0_i32_0 = arith.constant 0 : i32
    return %arg0, %c0_i32 : i32, i32
  }
  func.func @transform_1(%arg0: i32) -> (i32, i32) {
    %c0_i32 = arith.constant 0 : i32
    %c0_i32_0 = arith.constant 0 : i32
    %c0_i32_1 = arith.constant 0 : i32
    return %c0_i32, %c0_i32_0 : i32, i32
  }
  func.func @transform_2(%arg0: i32) -> (i32, i32) {
    %c0_i32 = arith.constant 0 : i32
    %c0_i32_0 = arith.constant 0 : i32
    %c0_i32_1 = arith.constant 0 : i32
    return %c0_i32, %c0_i32_0 : i32, i32
  }
  func.func @transform_3(%arg0: i32) -> (i32, i32) {
    %c0_i32 = arith.constant 0 : i32
    %c0_i32_0 = arith.constant 0 : i32
    %c0_i32_1 = arith.constant 0 : i32
    return %c0_i32, %c0_i32_0 : i32, i32
  }
  func.func @transform_4(%arg0: i32) -> (i32, i32) {
    %c0_i32 = arith.constant 0 : i32
    %c0_i32_0 = arith.constant 0 : i32
    %c0_i32_1 = arith.constant 0 : i32
    return %c0_i32, %c0_i32_0 : i32, i32
  }
  func.func @transform_5(%arg0: i32) -> (i32, i32) {
    %c0_i32 = arith.constant 0 : i32
    %c0_i32_0 = arith.constant 0 : i32
    return %arg0, %c0_i32 : i32, i32
  }
}

</mosaic_0001>

<bundles_post_ra>
// kernel: feature_extractor_forward.1
= control target key start
LH: loop header
LB: loop body
LE: loop exit
PB: predicated region body
PF: predicated region fallthrough
CT: control target
= control target key end

     0   :  { %v308_v1 = vmov 0.0   ;;  %vm309_vm0 = vmmov 0   ;;  %vm46_vm1 = vcmask 261120   ;;  %s392_s0 = inlined_call_operand.vmem [shape: bf16[8,32], index: 0, kind: input, shape index: {}]   ;;  %s393_s1 = inlined_call_operand.vmem [shape: bf16[32,128], index: 1, kind: input, shape index: {}]   ;;  %s394_s2 = inlined_call_operand.vmem [shape: f32[1,128], index: 2, kind: input, shape index: {}]   ;;  %s395_s3 = inlined_call_operand.vmem [shape: bf16[128,128], index: 3, kind: input, shape index: {}]   ;;  %s396_s4 = inlined_call_operand.vmem [shape: f32[1,128], index: 4, kind: input, shape index: {}]   ;;  %s397_s5 = inlined_call_operand.hbm [shape: f32[8,128], index: 5, kind: output, shape index: {}]  }
   0x1   :  { %v274_v0 = vld [vmem:[%s393_s1] sm:$0xff]   ;;  %243 = vmatprep.subr.bf16.mxu0 %v308_v1  ;;  %251 = vmatprep.subr.bf16.mxu1 %v308_v1  ;;  %v275_v2 = vld [vmem:[%s393_s1 + $0x8] sm:$0xff]   ;;  %v278_v6 = vld [vmem:[%s395_s3 + $0x10] sm:$0xff]  }
   0x2   :  { %244 = vmatpush3.bf16.msra.mxu0 %v274_v0  ;;  %247 = vmatprep.mubr.msk.bf16.mxu0 %vm309_vm0, %v308_v1  ;;  %v276_v3 = vld [vmem:[%s395_s3] sm:$0xff]   ;;  %v277_v4 = vld [vmem:[%s395_s3 + $0x8] sm:$0xff]  }
   0x3   :  { %245 = vmatprep.subr.bf16.mxu0 %v308_v1  ;;  %267 = vmatprep.mubr.msk.bf16.mxu1 %vm309_vm0, %v308_v1  ;;  %v22_v5 = vld [vmem:[%s392_s0] sm:$0xf] }
   0x4   :  { %252 = vmatpush3.bf16.msra.mxu1 %v276_v3 }
   0x5   :  { %253 = vmatprep.subr.bf16.mxu1 %v308_v1 }
   0x6   :  { %246 = vmatpush3.bf16.msra.mxu0 %v275_v2 }
   0x8   :  { %254 = vmatpush3.bf16.msra.mxu1 %v277_v4 }
   0x9   :  { %248 = vmatmul.mubr.msk.bf16.vlgmr.msra.gmra.mrb[0].mxu0 %vm46_vm1, %v22_v5  ;;  %255 = vmatprep.subr.bf16.mxu1 %v308_v1 }
   0xa   :  { %10 = vsyncpa [#allocation3], 0  ;;  %v279_v7 = vld [vmem:[%s395_s3 + $0x18] sm:$0xff]   ;;  %v280_v8 = vld [vmem:[%s395_s3 + $0x20] sm:$0xff]   ;;  %s310_s17 = smov [#allocation2]  }
   0xb   :  { %v281_v9 = vld [vmem:[%s395_s3 + $0x28] sm:$0xff]   ;;  %v282_v10 = vld [vmem:[%s395_s3 + $0x30] sm:$0xff]   ;;  %v283_v11 = vld [vmem:[%s395_s3 + $0x38] sm:$0xff]   ;;  %s210_s18 = sshll.u32 %s310_s17, 4  ;;  %s211_s18 = int_to_ptr.vmem [resolvable:$true] %s210_s18 }
   0xc   :  { %256 = vmatpush3.bf16.msra.mxu1 %v278_v6  ;;  %v218_v12 = vld [vmem:[%s394_s2] ss:$0 sm:$0xff]  ;;  %s284_s2 = scalar_lea.vmem %s211_s18, 128  ;;  %p289_p1 = scmp.lt.s32.totalorder %s211_s18, %s211_s18 }
   0xd   :  { %257 = vmatprep.subr.bf16.mxu1 %v308_v1  ;;  %v222_v20 = vld [vmem:[%s396_s4] ss:$0 sm:$0xff]  ;;  %p285_p0 = scmp.ne.s32.totalorder %s211_s18, %s284_s2  ;;  %p290_p2 = scmp.lt.s32.totalorder %s284_s2, %s284_s2 }
   0xf   :  { %p291_p3 = por %p290_p2, %p289_p1 }
  0x10   :  { %258 = vmatpush3.bf16.msra.mxu1 %v279_v7 }
  0x11   :  { %259 = vmatprep.subr.bf16.mxu1 %v308_v1  ;;  %p292_p4 = pnand %p291_p3, %p285_p0 }
  0x14   :  { %260 = vmatpush3.bf16.msra.mxu1 %v280_v8 }
  0x15   :  { %261 = vmatprep.subr.bf16.mxu1 %v308_v1 }
  0x18   :  { %262 = vmatpush3.bf16.msra.mxu1 %v281_v9 }
  0x19   :  { %263 = vmatprep.subr.bf16.mxu1 %v308_v1 }
  0x1c   :  { %264 = vmatpush3.bf16.msra.mxu1 %v282_v10 }
  0x1d   :  { %265 = vmatprep.subr.bf16.mxu1 %v308_v1 }
  0x20   :  { %266 = vmatpush3.bf16.msra.mxu1 %v283_v11 }
  0xdc   :  { %v84_v13 = vpop.f32.mrb[0].mxu0 }
  0xdd   :  { %v85_v14 = vadd.f32 %v218_v12, %v84_v13  ;;  %v249_v15 = vpop.f32.mrb[1].mxu0 }
  0xde   :  { %v87_v16 = vpop.f32.mrb[2].mxu0 }
  0xdf   :  { %v90_v17 = vmax.f32 %v85_v14, 0.0  ;;  %v250_v18 = vpop.f32.mrb[3].mxu0 }
  0xe1   :  { %v91_v19 = vpack.c.bf16 %v90_v17, %v90_v17 }
  0xe3   :  { %268 = vmatmul.mubr.bf16.vlgmr.msra.gmra.mrb[0].mxu1 %v91_v19 }
 0x1b6   :  { %v197_v21 = vpop.f32.mrb[0].mxu1 }
 0x1b7   :  { %v198_v22 = vadd.f32 %v222_v20, %v197_v21  ;;  %v269_v23 = vpop.f32.mrb[1].mxu1 }
 0x1b8   :  { %v200_v24 = vpop.f32.mrb[2].mxu1 }
 0x1b9   :  { %203 = vst [vmem:[#allocation2] sm:$0xff] %v198_v22  ;;  %v270_v25 = vpop.f32.mrb[3].mxu1 }
 0x1ba   :  { %295 = shalt.err (!%p292_p4)
}
 0x1bb   :  { %s296_s4 = scalar_lea.hbm %s397_s5, 128 }
 0x1bc   :  { %p297_p5 = scmp.ne.s32.totalorder %s397_s5, %s296_s4  ;;  %p300_p6 = scmp.lt.u32.totalorder %s296_s4, %s397_s5 }
 0x1be   :  { %p302_p7 = pnand %p300_p6, %p297_p5 }
 0x1c0   :  { %305 = shalt.err (!%p302_p7)
}
 0x1c1   :  { %213 = dma.vmem_to_hbm [thread:$0]  %s211_s18, 128, %s397_s5, [#allocation3]  }
 0x1c2   :  { %306 = dma.done.wait [#allocation3], 128  }
 0x1c3   :  { %307 = vsyncadd [#allocation3], 4294967168 }
 0x1c4   :  { %217 = vsyncpa [#allocation3], 1 }

</bundles_post_ra>
